<compile_context>
chip_gen: v7x
topology: tpu7x:2x2x1
jax: 0.10.0
libtpu: 0.0.40
codegen_flags: <defaults>
</compile_context>

<pallas_src>
import functools

import jax
import jax.numpy as jnp
from jax.experimental import pallas as pl
from jax.experimental.pallas import tpu as pltpu


def _prompt_mul_kernel(w_ref, x_ref, o_ref):
    # w_ref: (1, C)  prompt weight row, same block every grid step (resident).
    # x_ref: (tm, C) row tile of the graph embedding.
    # o_ref: (tm, C) output tile.
    o_ref[...] = x_ref[...] * w_ref[...]


def _sublane(dtype):
    itemsize = jnp.dtype(dtype).itemsize
    return {4: 8, 2: 16, 1: 32}.get(itemsize, 8)


@functools.partial(jax.jit, static_argnames=("target_block_bytes",))
def downstream_prompt(weight, graph_embedding, target_block_bytes=2 * 1024 * 1024):
    """out = weight * graph_embedding, weight (1, H) broadcast over all rows."""
    orig_shape = graph_embedding.shape
    H = orig_shape[-1]
    dtype = graph_embedding.dtype
    itemsize = jnp.dtype(dtype).itemsize
    sub = _sublane(dtype)

    x2d = graph_embedding.reshape(-1, H)
    N = x2d.shape[0]
    # Match the embedding dtype on the host (avoids implicit promotion in-kernel).
    w = weight.reshape(1, H).astype(dtype)

    # --- choose a lane-dense layout with zero padding ---------------------
    # If H divides 128, reshape row-major to (N*H/L, L) with L a multiple of
    # 128 and tile the weight along lanes: element (r, l) needs w[l % H].
    L = None
    if H < 128 and 128 % H == 0:
        for cand in (1024, 512, 256, 128):
            if (N * H) % cand == 0:
                L = cand
                break
    if L is not None:
        x_k = x2d.reshape(-1, L)          # contiguous reshape: no data movement
        w_k = jnp.tile(w, (1, L // H))    # tiny (1, L) host-side tile
    else:
        x_k = x2d                         # block last dim = H (full-dim exception)
        w_k = w

    R, C = x_k.shape

    # --- row tile sized toward target_block_bytes, dtype-sublane aligned ---
    tm = (target_block_bytes // (C * itemsize)) // sub * sub
    tm = max(sub, tm)

    if tm >= R:
        # Tiny / single-block fast path: full-array block, one grid step.
        grid = (1,)
        block = (R, C)
    else:
        grid = (pl.cdiv(R, tm),)          # partial last block masked by Pallas
        block = (tm, C)

    out_k = pl.pallas_call(
        _prompt_mul_kernel,
        out_shape=jax.ShapeDtypeStruct((R, C), dtype),
        grid_spec=pltpu.PrefetchScalarGridSpec(
            num_scalar_prefetch=0,
            grid=grid,
            in_specs=[
                # Prompt weight row: constant index_map -> stays resident.
                pl.BlockSpec((1, C), lambda i: (0, 0)),
                # Row tile of the embedding.
                pl.BlockSpec(block, lambda i: (i, 0)),
            ],
            out_specs=pl.BlockSpec(block, lambda i: (i, 0)),
        ),
        compiler_params=pltpu.CompilerParams(
            dimension_semantics=("parallel",),
        ),
    )(w_k, x_k)

    return out_k.reshape(orig_shape)


if __name__ == "__main__":
    key = jax.random.PRNGKey(0)
    k_w, k_x = jax.random.split(key)

    hid_units = 32
    n_nodes = 64

    # xavier_uniform_-style init for the (1, hid_units) prompt weight.
    bound = (6.0 / (1.0 + hid_units)) ** 0.5
    weight = jax.random.uniform(
        k_w, (1, hid_units), dtype=jnp.float32, minval=-bound, maxval=bound
    )
    graph_embedding = jax.random.normal(k_x, (n_nodes, hid_units), dtype=jnp.float32)

    # 1) Default path (tiny input -> single lane-dense full-array block).
    out = jax.block_until_ready(downstream_prompt(weight, graph_embedding))
    ref = weight * graph_embedding
    assert out.shape == graph_embedding.shape
    assert jnp.allclose(out, ref, atol=1e-6, rtol=1e-6), "mismatch vs reference (1)"

    # 2) Multi-step lane-dense path with a row remainder (small block budget
    #    just to exercise the tiled + masked-partial-block code path).
    n2, h2 = 300, 32  # N*H = 9600 -> lane-dense reshape to (75, 128)
    x2 = jax.random.normal(jax.random.PRNGKey(1), (n2, h2), dtype=jnp.float32)
    w2 = jax.random.uniform(
        jax.random.PRNGKey(2), (1, h2), dtype=jnp.float32, minval=-bound, maxval=bound
    )
    out2 = jax.block_until_ready(
        downstream_prompt(w2, x2, target_block_bytes=16 * 1024)
    )
    assert jnp.allclose(out2, w2 * x2, atol=1e-6, rtol=1e-6), "mismatch vs reference (2)"

    # 3) Hidden dim that does not divide 128 -> full-dim lane block, no padding.
    n3, h3 = 100, 48
    x3 = jax.random.normal(jax.random.PRNGKey(3), (n3, h3), dtype=jnp.float32)
    w3 = jax.random.uniform(
        jax.random.PRNGKey(4), (1, h3), dtype=jnp.float32, minval=-bound, maxval=bound
    )
    out3 = jax.block_until_ready(
        downstream_prompt(w3, x3, target_block_bytes=8 * 1024)
    )
    assert jnp.allclose(out3, w3 * x3, atol=1e-6, rtol=1e-6), "mismatch vs reference (3)"

    print("KERNEL_OK")
</pallas_src>

<mosaic_0001>
module attributes {stable_mosaic.version = 11 : i64} {
  func.func @_prompt_mul_kernel(%arg0: i32, %arg1: memref<1x1024xf32, #tpu.memory_space<vmem>>, %arg2: memref<2x1024xf32, #tpu.memory_space<vmem>>, %arg3: memref<2x1024xf32, #tpu.memory_space<vmem>>) attributes {dimension_semantics = [#tpu.dimension_semantics<parallel>], iteration_bounds = array<i64: 1>, scalar_prefetch = 0 : i64, scratch_operands = 0 : i64, tpu.core_type = #tpu.core_type<tc>, window_params = [{pipeline_mode = #tpu.pipeline_mode<synchronous>, transform_indices = @transform_0, window_bounds = array<i64: 1, 1024>}, {transform_indices = @transform_1, window_bounds = array<i64: 2, 1024>}, {transform_indices = @transform_2, window_bounds = array<i64: 2, 1024>}]} {
    %c0 = arith.constant 0 : index
    %c0_0 = arith.constant 0 : index
    %0 = vector.load %arg2[%c0, %c0_0] : memref<2x1024xf32, #tpu.memory_space<vmem>>, vector<2x1024xf32>
    %c0_1 = arith.constant 0 : index
    %c0_2 = arith.constant 0 : index
    %1 = vector.load %arg1[%c0_1, %c0_2] : memref<1x1024xf32, #tpu.memory_space<vmem>>, vector<1x1024xf32>
    %2 = vector.broadcast %1 : vector<1x1024xf32> to vector<2x1024xf32>
    %3 = arith.mulf %0, %2 : vector<2x1024xf32>
    %c0_3 = arith.constant 0 : index
    %c0_4 = arith.constant 0 : index
    %4 = vector.load %arg3[%c0_3, %c0_4] : memref<2x1024xf32, #tpu.memory_space<vmem>>, vector<2x1024xf32>
    tpu.vector_store %arg3[%c0_3, %c0_4], %3 {strides = array<i32>} : memref<2x1024xf32, #tpu.memory_space<vmem>>, vector<2x1024xf32>,
    return
  }
  func.func @transform_0(%arg0: i32) -> (i32, i32) {
    %c0_i32 = arith.constant 0 : i32
    %c0_i32_0 = arith.constant 0 : i32
    %c0_i32_1 = arith.constant 0 : i32
    return %c0_i32, %c0_i32_0 : i32, i32
  }
  func.func @transform_1(%arg0: i32) -> (i32, i32) {
    %c0_i32 = arith.constant 0 : i32
    %c0_i32_0 = arith.constant 0 : i32
    return %arg0, %c0_i32 : i32, i32
  }
  func.func @transform_2(%arg0: i32) -> (i32, i32) {
    %c0_i32 = arith.constant 0 : i32
    %c0_i32_0 = arith.constant 0 : i32
    return %arg0, %c0_i32 : i32, i32
  }
}

</mosaic_0001>

<bundles_post_ra>
// kernel: downstream_prompt.1
= control target key start
LH: loop header
LB: loop body
LE: loop exit
PB: predicated region body
PF: predicated region fallthrough
CT: control target
= control target key end

     0   :  { %v15_v0 = vlaneseq  ;;  %v92_v1 = vmov 1983009808   ;;  %s123_s0 = inlined_call_operand.vmem [shape: f32[1,1024], index: 0, kind: input, shape index: {}]   ;;  %s124_s1 = inlined_call_operand.vmem [shape: f32[2,1024], index: 1, kind: input, shape index: {}]   ;;  %s125_s2 = inlined_call_operand.vmem [shape: f32[2,1024], index: 2, kind: output, shape index: {}]  }
   0x1   :  { %v50_v2 = vunpack.c.l.s4 %v92_v1  ;;  %v13_v4 = vld [vmem:[%s123_s0] sm:$0xff]  ;;  %v12_v34 = vld [vmem:[%s124_s1 + $0x8] sm:$0xff] }
   0x2   :  { %v16_v3 = vshrl.u32 %v15_v0, 7  ;;  %v11_v28 = vld [vmem:[%s124_s1] sm:$0xff] }
   0x3   :  { %v51_v5 = vunpack.c.0.s8 %v50_v2 }
   0x4   :  { %v17_v6 = vsub.s32 0, %v16_v3  ;;  %v21_v7 = vsub.s32 1, %v16_v3  ;;  %v25_v8 = vsub.s32 2, %v16_v3  ;;  %v29_v9 = vsub.s32 3, %v16_v3 }
   0x5   :  { %v54_v10 = vsub.s32 %v51_v5, %v16_v3  ;;  %v33_v11 = vsub.s32 4, %v16_v3  ;;  %v37_v12 = vsub.s32 5, %v16_v3  ;;  %v41_v13 = vsub.s32 6, %v16_v3 }
   0x6   :  { %v18_v14 = vrot.slane %v13_v4, %v17_v6  ;;  %v22_v15 = vrot.slane %v13_v4, %v21_v7  ;;  %v26_v16 = vrot.slane %v13_v4, %v25_v8  ;;  %v30_v17 = vrot.slane %v13_v4, %v29_v9 }
   0x7   :  { %v34_v18 = vrot.slane %v13_v4, %v33_v11  ;;  %v38_v19 = vrot.slane %v13_v4, %v37_v12  ;;  %v42_v20 = vrot.slane %v13_v4, %v41_v13  ;;  %v45_v21 = vsub.s32 7, %v16_v3 }
   0x8   :  { %v47_v22 = vcombine.low %v18_v14, %v22_v15  ;;  %v48_v23 = vcombine.low %v26_v16, %v30_v17 }
   0x9   :  { %v46_v24 = vrot.slane %v13_v4, %v45_v21  ;;  %v64_v25 = vcombine.low %v34_v18, %v38_v19 }
   0xa   :  { %v55_v26 = vrot.slane %v47_v22, %v54_v10  ;;  %v62_v27 = vrot.slane %v48_v23, %v54_v10 }
   0xb   :  { %v65_v29 = vcombine.low %v42_v20, %v46_v24  ;;  %v72_v30 = vrot.slane %v64_v25, %v54_v10 }
   0xc   :  { %v63_v31 = vcombine.low %v55_v26, %v62_v27 }
   0xd   :  { %v79_v32 = vrot.slane %v65_v29, %v54_v10 }
   0xe   :  { %v83_v33 = vmul.f32 %v63_v31, %v11_v28 }
   0xf   :  { %v80_v35 = vcombine.low %v72_v30, %v79_v32 }
  0x10   :  { %85 = vst [vmem:[%s125_s2] sm:$0xff] %v83_v33 }
  0x11   :  { %v84_v36 = vmul.f32 %v80_v35, %v12_v34 }
  0x13   :  { %86 = vst [vmem:[%s125_s2 + $0x8] sm:$0xff] %v84_v36 }

</bundles_post_ra>
